<compile_context>
chip_gen: v6e
topology: v6e:2x2x1
jax: 0.10.0
libtpu: 0.0.40
codegen_flags: <defaults>
</compile_context>

<pallas_src>
import functools

import jax
import jax.numpy as jnp
from jax.experimental import pallas as pl
from jax.experimental.pallas import tpu as pltpu


# ----------------------------------------------------------------------------
# GAP1d Pallas kernel
# ----------------------------------------------------------------------------

_MIN_PALLAS_ELEMS = 2048          # below this, plain jnp.mean wins on overhead
_TARGET_TILE_BYTES = 4 * 1024 * 1024  # per input buffer; x2 for double-buffering


def _round_up(a: int, b: int) -> int:
    return ((a + b - 1) // b) * b


def _gap1d_kernel(x_ref, o_ref, acc_ref, *, inv_l):
    # x_ref:   (n_tile, l_tile, C) block of the (N, L, C) input
    # o_ref:   (n_tile, C) output block (resident across the L grid axis)
    # acc_ref: (n_tile, C) float32 accumulator scratch
    li = pl.program_id(1)

    @pl.when(li == 0)
    def _():
        acc_ref[...] = jnp.zeros_like(acc_ref)

    # Running sum over the streamed L axis (leading axis of the last-two dims
    # -> plain VPU adds, no cross-lane XLU reduce). Upcast chunk-wise only.
    acc_ref[...] += jnp.sum(x_ref[...].astype(jnp.float32), axis=1)

    @pl.when(li == pl.num_programs(1) - 1)
    def _():
        # Single multiply by the compile-time constant 1/L at finalize.
        o_ref[...] = (acc_ref[...] * inv_l).astype(o_ref.dtype)


def gap1d(x: jnp.ndarray) -> jnp.ndarray:
    """Global average pool over the last axis of an (N, C, L) array -> (N, C).

    Equivalent to nn.Flatten()(nn.AdaptiveAvgPool1d(1)(x)).
    """
    n, c, l = x.shape
    if l == 1 or x.size <= _MIN_PALLAS_ELEMS:
        # Fixed pallas_call / grid-step overhead dwarfs the work for tiny inputs.
        return jnp.mean(x, axis=-1)

    # Channels on the lane (last) axis; reduction over a leading axis.
    xt = jnp.transpose(x, (0, 2, 1))  # (N, L, C)

    itemsize = jnp.dtype(x.dtype).itemsize

    # Batch tile: 8 keeps the (n_tile, C) output block sublane-aligned and lets
    # the N grid axis shard across TensorCores; small batches use n_tile = N.
    n_tile = 8 if n >= 8 else n
    n_pad = _round_up(n, n_tile)

    # Largest streamed L tile (multiple of 8) that keeps one input buffer
    # within the per-buffer VMEM budget; target >=512 streamed elements.
    max_l_tile = max(8, _TARGET_TILE_BYTES // max(1, n_tile * c * itemsize))
    l_tile = min(512, max_l_tile, _round_up(l, 8))
    l_tile = max(8, (l_tile // 8) * 8)
    l_pad = _round_up(l, l_tile)

    if (n_pad, l_pad) != (n, l):
        # Zero padding does not change the sum; we divide by the original L.
        xt = jnp.pad(xt, ((0, n_pad - n), (0, l_pad - l), (0, 0)))

    grid = (n_pad // n_tile, l_pad // l_tile)
    kernel = functools.partial(_gap1d_kernel, inv_l=1.0 / l)

    out = pl.pallas_call(
        kernel,
        out_shape=jax.ShapeDtypeStruct((n_pad, c), x.dtype),
        grid_spec=pltpu.PrefetchScalarGridSpec(
            num_scalar_prefetch=0,
            grid=grid,
            in_specs=[
                pl.BlockSpec((n_tile, l_tile, c), lambda ni, li: (ni, li, 0)),
            ],
            out_specs=pl.BlockSpec((n_tile, c), lambda ni, li: (ni, 0)),
            scratch_shapes=[pltpu.VMEM((n_tile, c), jnp.float32)],
        ),
        compiler_params=pltpu.CompilerParams(
            dimension_semantics=("parallel", "arbitrary"),
        ),
        cost_estimate=pl.CostEstimate(
            flops=int(n_pad) * int(c) * int(l_pad),
            transcendentals=0,
            bytes_accessed=int(n_pad) * int(l_pad) * int(c) * itemsize
            + int(n_pad) * int(c) * itemsize,
        ),
    )(xt)

    return out[:n] if n_pad != n else out


# ----------------------------------------------------------------------------
# FCN forward (Conv1d 'same' + BatchNorm1d (inference) + ReLU) x3 -> GAP1d
# ----------------------------------------------------------------------------
# TODO(synk): Conv1d/BatchNorm1d/ReLU stack stays on XLA (lax.conv_general_dilated);
# only the GAP1d head is a hand-written Pallas kernel.


def init_fcn_params(key, in_dim: int):
    specs = [(in_dim, 128, 8), (128, 256, 5), (256, 128, 3)]
    keys = jax.random.split(key, len(specs))
    params = []
    for k, (c_in, c_out, ksz) in zip(keys, specs):
        fan_in = c_in * ksz
        w = jax.random.normal(k, (c_out, c_in, ksz), dtype=jnp.float32) / jnp.sqrt(
            jnp.float32(fan_in)
        )
        params.append(
            dict(
                w=w,
                b=jnp.zeros((c_out,), jnp.float32),
                gamma=jnp.ones((c_out,), jnp.float32),
                beta=jnp.zeros((c_out,), jnp.float32),
                mean=jnp.zeros((c_out,), jnp.float32),
                var=jnp.ones((c_out,), jnp.float32),
            )
        )
    return params


def _conv_bn_relu(x, p, eps: float = 1e-5):
    # Conv1d(stride=1, padding='same'): XLA 'SAME' (left=(k-1)//2, right=k-1-left)
    # matches PyTorch's padding='same' split for stride 1.
    y = jax.lax.conv_general_dilated(
        x,
        p["w"],
        window_strides=(1,),
        padding="SAME",
        dimension_numbers=("NCH", "OIH", "NCH"),
    )
    y = y + p["b"][None, :, None]
    # BatchNorm1d in inference mode (running stats; gamma=1, beta=0, mean=0, var=1).
    inv = jax.lax.rsqrt(p["var"] + eps)
    scale = (p["gamma"] * inv)[None, :, None]
    shift = (p["beta"] - p["mean"] * p["gamma"] * inv)[None, :, None]
    y = y * scale + shift
    return jnp.maximum(y, 0.0)


def fcn_forward(params, x):
    for p in params:
        x = _conv_bn_relu(x, p)
    return gap1d(x)


# ----------------------------------------------------------------------------
# Self-test
# ----------------------------------------------------------------------------

if __name__ == "__main__":
    key = jax.random.PRNGKey(0)
    k1, k2, k3, k4 = jax.random.split(key, 4)

    # 1) GAP1d Pallas path at the shape the FCN head sees: (N=2, C=128, L=16).
    xg = jax.random.normal(k1, (2, 128, 16), dtype=jnp.float32)
    out = gap1d(xg)
    jax.block_until_ready(out)
    ref = jnp.mean(xg, axis=-1)
    assert out.shape == (2, 128), out.shape
    assert jnp.allclose(out, ref, atol=1e-5, rtol=1e-5), "GAP1d mismatch (small)"

    # 2) GAP1d Pallas path with a multi-step L reduction grid + L padding.
    xl = jax.random.normal(k2, (8, 128, 640), dtype=jnp.float32)
    out_l = gap1d(xl)
    jax.block_until_ready(out_l)
    ref_l = jnp.mean(xl, axis=-1)
    assert out_l.shape == (8, 128), out_l.shape
    assert jnp.allclose(out_l, ref_l, atol=1e-5, rtol=1e-5), "GAP1d mismatch (tiled)"

    # 3) Tiny-shape dispatch path (short-circuits to jnp.mean).
    xt = jax.random.normal(k3, (2, 4, 16), dtype=jnp.float32)
    assert jnp.allclose(gap1d(xt), jnp.mean(xt, axis=-1), atol=1e-6)

    # 4) Full FCN forward: batch=2, in_dim=4, length=16 -> (2, 128).
    params = init_fcn_params(k4, in_dim=4)
    y = fcn_forward(params, xt)
    jax.block_until_ready(y)
    assert y.shape == (2, 128), y.shape
    assert jnp.all(jnp.isfinite(y))

    print("KERNEL_OK")
</pallas_src>

<mosaic_0001>
module attributes {stable_mosaic.version = 11 : i64} {
  func.func @_gap1d_kernel(%arg0: i32, %arg1: i32, %arg2: memref<2x16x128xf32, #tpu.memory_space<vmem>>, %arg3: memref<2x128xf32, #tpu.memory_space<vmem>>, %arg4: memref<2x128xf32, #tpu.memory_space<vmem>>) attributes {dimension_semantics = [#tpu.dimension_semantics<parallel>, #tpu.dimension_semantics<arbitrary>], iteration_bounds = array<i64: 1, 1>, scalar_prefetch = 0 : i64, scratch_operands = 1 : i64, tpu.core_type = #tpu.core_type<tc>, window_params = [{transform_indices = @transform_0, window_bounds = array<i64: 2, 16, 128>}, {transform_indices = @transform_1, window_bounds = array<i64: 2, 128>}]} {
    %c0_i32 = arith.constant 0 : i32
    %0 = arith.cmpi eq, %arg1, %c0_i32 : i32
    %1 = arith.extui %0 : i1 to i32
    %c0_i32_0 = arith.constant 0 : i32
    %2 = arith.cmpi ne, %1, %c0_i32_0 : i32
    scf.if %2 {
      %cst_9 = arith.constant 0.000000e+00 : f32
      %11 = vector.broadcast %cst_9 : f32 to vector<2x128xf32>
      %c0_10 = arith.constant 0 : index
      %c0_11 = arith.constant 0 : index
      %12 = vector.load %arg4[%c0_10, %c0_11] : memref<2x128xf32, #tpu.memory_space<vmem>>, vector<2x128xf32>
      tpu.vector_store %arg4[%c0_10, %c0_11], %11 {strides = array<i32>} : memref<2x128xf32, #tpu.memory_space<vmem>>, vector<2x128xf32>,
    } else {
    }
    %c0 = arith.constant 0 : index
    %c0_1 = arith.constant 0 : index
    %3 = vector.load %arg4[%c0, %c0_1] : memref<2x128xf32, #tpu.memory_space<vmem>>, vector<2x128xf32>
    %c0_2 = arith.constant 0 : index
    %c0_3 = arith.constant 0 : index
    %c0_4 = arith.constant 0 : index
    %4 = vector.load %arg2[%c0_2, %c0_3, %c0_4] : memref<2x16x128xf32, #tpu.memory_space<vmem>>, vector<2x16x128xf32>
    %cst = arith.constant dense<0.000000e+00> : vector<2x128xf32>
    %5 = vector.multi_reduction <add>, %4, %cst [1] : vector<2x16x128xf32> to vector<2x128xf32>
    %6 = arith.addf %3, %5 : vector<2x128xf32>
    %c0_5 = arith.constant 0 : index
    %c0_6 = arith.constant 0 : index
    %7 = vector.load %arg4[%c0_5, %c0_6] : memref<2x128xf32, #tpu.memory_space<vmem>>, vector<2x128xf32>
    tpu.vector_store %arg4[%c0_5, %c0_6], %6 {strides = array<i32>} : memref<2x128xf32, #tpu.memory_space<vmem>>, vector<2x128xf32>,
    %c0_i32_7 = arith.constant 0 : i32
    %8 = arith.cmpi eq, %arg1, %c0_i32_7 : i32
    %9 = arith.extui %8 : i1 to i32
    %c0_i32_8 = arith.constant 0 : i32
    %10 = arith.cmpi ne, %9, %c0_i32_8 : i32
    scf.if %10 {
      %c0_9 = arith.constant 0 : index
      %c0_10 = arith.constant 0 : index
      %11 = vector.load %arg4[%c0_9, %c0_10] : memref<2x128xf32, #tpu.memory_space<vmem>>, vector<2x128xf32>
      %cst_11 = arith.constant 6.250000e-02 : f32
      %12 = vector.broadcast %cst_11 : f32 to vector<2x128xf32>
      %13 = arith.mulf %11, %12 : vector<2x128xf32>
      %c0_12 = arith.constant 0 : index
      %c0_13 = arith.constant 0 : index
      %14 = vector.load %arg3[%c0_12, %c0_13] : memref<2x128xf32, #tpu.memory_space<vmem>>, vector<2x128xf32>
      tpu.vector_store %arg3[%c0_12, %c0_13], %13 {strides = array<i32>} : memref<2x128xf32, #tpu.memory_space<vmem>>, vector<2x128xf32>,
    } else {
    }
    return
  }
  func.func @transform_0(%arg0: i32, %arg1: i32) -> (i32, i32, i32) {
    %c0_i32 = arith.constant 0 : i32
    %c0_i32_0 = arith.constant 0 : i32
    return %arg0, %arg1, %c0_i32 : i32, i32, i32
  }
  func.func @transform_1(%arg0: i32, %arg1: i32) -> (i32, i32) {
    %c0_i32 = arith.constant 0 : i32
    %c0_i32_0 = arith.constant 0 : i32
    return %arg0, %c0_i32 : i32, i32
  }
}

</mosaic_0001>

<bundles_post_ra>
// kernel: tpu_custom_call.1
= control target key start
LH: loop header
LB: loop body
LE: loop exit
PB: predicated region body
PF: predicated region fallthrough
CT: control target
= control target key end

     0   :  { %6 = vsyncpa [#allocation4], 0  ;;  %s145_s0 = inlined_call_operand.hbm [shape: f32[2,16,128], index: 0, kind: input, shape index: {}]   ;;  %s146_s1 = inlined_call_operand.hbm [shape: f32[2,128], index: 1, kind: output, shape index: {}]  }
   0x1   :  { %7 = vsyncpa [#allocation5], 0  ;;  %s124_s6 = smov [#allocation3]  }
   0x2   :  { %s13_s7 = sshll.u32 %s124_s6, 4  ;;  %s14_s7 = int_to_ptr.vmem [resolvable:$true] %s13_s7 }
   0x3   :  { %s88_s8 = scalar_lea.vmem %s14_s7, 512  ;;  %p93_p1 = scmp.lt.s32.totalorder %s14_s7, %s14_s7 }
   0x4   :  { %p89_p0 = scmp.ne.s32.totalorder %s14_s7, %s88_s8  ;;  %p94_p2 = scmp.lt.s32.totalorder %s88_s8, %s88_s8 }
   0x6   :  { %p95_p3 = por %p94_p2, %p93_p1 }
   0x8   :  { %p96_p4 = pnand %p95_p3, %p89_p0 }
   0xa   :  { %99 = shalt.err (!%p96_p4)
}
   0xb   :  { %s125_s9 = smov 128   ;;  %s126_s10 = smov 8  }
   0xc   :  { %19 = dma.hbm_to_vmem [thread:$0]  %s145_s0, 512, %s14_s7, [#allocation4], %s125_s9, %s125_s9, %s126_s10  }
   0xd   :  { %120 = dma.done.wait [#allocation4], 512  }
   0xe   :  { %121 = vsyncadd [#allocation4], 4294966784  ;;  %v127_v0 = vmov 0.0   ;;  %v29_v1 = vld [vmem:[#allocation3] sm:$0xff]  ;;  %v30_v2 = vld [vmem:[#allocation3 + $0x8] sm:$0xff]  ;;  %vm49_vm0 = vcmask 1041409  }
   0xf   :  { %27 = vst [vmem:[#allocation2] sm:$0x3] %v127_v0  ;;  %v31_v3 = vld [vmem:[#allocation3 + $0x10] sm:$0xff]  ;;  %v32_v4 = vld [vmem:[#allocation3 + $0x18] sm:$0xff]  ;;  %v33_v5 = vadd.f32 %v30_v2, %v29_v1  ;;  %s128_s0 = smov [#allocation6]  }
  0x10   :  { %v40_v6 = vadd.f32 %v32_v4, %v31_v3  ;;  %s66_s13 = sshll.u32 %s128_s0, 4  ;;  %s67_s13 = int_to_ptr.vmem [resolvable:$true] %s66_s13 }
  0x11   :  { %v34_v7 = vrot.slane %v33_v5, 4  ;;  %s100_s14 = scalar_lea.vmem %s67_s13, 32  ;;  %p105_p6 = scmp.lt.s32.totalorder %s67_s13, %s67_s13 }
  0x12   :  { %v41_v8 = vrot.slane %v40_v6, 4  ;;  %p101_p5 = scmp.ne.s32.totalorder %s67_s13, %s100_s14  ;;  %p106_p7 = scmp.lt.s32.totalorder %s100_s14, %s100_s14 }
  0x13   :  { %v35_v9 = vadd.f32 %v34_v7, %v33_v5 }
  0x14   :  { %v42_v10 = vadd.f32 %v41_v8, %v40_v6  ;;  %p107_p8 = por %p106_p7, %p105_p6 }
  0x15   :  { %v36_v11 = vrot.slane %v35_v9, 2 }
  0x16   :  { %v43_v12 = vrot.slane %v42_v10, 2  ;;  %v28_v18 = vld [vmem:[#allocation2] sm:$0x3]  ;;  %p108_p9 = pnand %p107_p8, %p101_p5 }
  0x17   :  { %v37_v13 = vadd.f32 %v36_v11, %v35_v9 }
  0x18   :  { %v44_v14 = vadd.f32 %v43_v12, %v42_v10 }
  0x19   :  { %v38_v15 = vrot.slane %v37_v13, 1 }
  0x1a   :  { %v45_v16 = vrot.slane %v44_v14, 1 }
  0x1b   :  { %v39_v17 = vadd.f32 %v38_v15, %v37_v13 }
  0x1c   :  { %v46_v19 = vadd.f32 %v45_v16, %v44_v14 }
  0x1e   :  { %v50_v20 = vsel %vm49_vm0, %v46_v19, %v39_v17 }
  0x1f   :  { %v52_v21 = vadd.f32 %v50_v20, %v28_v18 }
  0x21   :  { %53 = vst [vmem:[#allocation2] sm:$0x3] %v52_v21 }
  0x28   :  { %v57_v22 = vld [vmem:[#allocation2] sm:$0x3] }
  0x29   :  { %v58_v23 = vmul.f32 0.0625, %v57_v22 }
  0x2b   :  { %59 = vst [vmem:[#allocation6] sm:$0x3] %v58_v23 }
  0x2c   :  { %111 = shalt.err (!%p108_p9)
}
  0x2d   :  { %69 = dma.vmem_to_hbm [thread:$0]  %s67_s13, 32, %s146_s1, [#allocation5]  }
  0x2e   :  { %122 = dma.done.wait [#allocation5], 32  }
  0x2f   :  { %123 = vsyncadd [#allocation5], 4294967264 }
  0x30   :  { %73 = vsyncpa [#allocation4], 1 }
  0x31   :  { %74 = vsyncpa [#allocation5], 1 }

</bundles_post_ra>
